<compile_context>
chip_gen: v6e
topology: v6e:2x2x1
jax: 0.10.0
libtpu: 0.0.40
codegen_flags: <defaults>
</compile_context>

<pallas_src>
import jax
import jax.numpy as jnp
from jax.experimental import pallas as pl
from jax.experimental.pallas import tpu as pltpu


# ------------------------------------------------------------------ kernel ---

def _conv1x1_kernel(x_ref, w_ref, b_ref, o_ref):
    # x_ref: (1, C_in, TP)   w_ref: (C_out, C_in)   b_ref: (C_out, 1)
    # o_ref: (1, C_out, TP)
    x = x_ref[0]                                                       # (C_in, TP)
    acc = jnp.dot(w_ref[...], x, preferred_element_type=jnp.float32)  # (C_out, TP)
    o_ref[0] = (acc + b_ref[...]).astype(o_ref.dtype)


# ------------------------------------------------------------- tile sizing ---

def _round_up(x, m):
    return ((x + m - 1) // m) * m


def _vmem_capacity_bytes():
    """Per-generation VMEM capacity; conservative (v7x) fallback if unknown."""
    try:
        info = pltpu.get_tpu_info()
        cap = getattr(info, "vmem_capacity_bytes", None)
        if cap:
            return int(cap)
    except Exception:
        pass
    return 64 << 20  # v7x has the smallest VMEM — safe everywhere


def _vmem_plan():
    cap = _vmem_capacity_bytes()
    # Budget for the double-buffered (input + output) pixel tiles per step.
    tile_budget = min(cap // 4, 16 << 20)          # <= 16 MiB double-buffered
    # Scoped-VMEM override: generous on v5e/v6e (128 MiB phys), <= 32 MiB on v7x.
    vmem_limit = min(cap // 2, 64 << 20)
    return tile_budget, vmem_limit


def _choose_pixel_tile(P, N, C_in, C_out, itemsize, tile_budget_bytes):
    """Lane-axis tile: multiple of 128, sized from the VMEM byte budget."""
    per_pixel = 2 * (C_in + C_out) * itemsize       # double-buffered in+out bytes/pixel
    tp = max(128, (tile_budget_bytes // per_pixel) // 128 * 128)
    P128 = _round_up(P, 128)
    tp = min(tp, P128)
    # v7x megacore: keep >= 2 total parallel grid steps so both TCs get work.
    if N < 2 and P128 >= 2 * 128:
        tp = min(tp, max(128, (P128 // 2) // 128 * 128))
    # Re-balance so the tail tile is as full as possible.
    n_tiles = pl.cdiv(P128, tp)
    tp = 128 * pl.cdiv(P128 // 128, n_tiles)
    return int(tp)


# ------------------------------------------------------------------ driver ---

def conv1x1_pallas(x3, w, b2d, *, tp=None):
    """x3: (N, C_in, P), w: (C_out, C_in), b2d: (C_out, 1) -> (N, C_out, P)."""
    N, C_in, P = x3.shape
    C_out = w.shape[0]
    tile_budget, vmem_limit = _vmem_plan()
    if tp is None:
        tp = _choose_pixel_tile(P, N, C_in, C_out, x3.dtype.itemsize, tile_budget)

    # Pad the pixel axis so tp divides it exactly (full, unmasked tail tile).
    P_pad = _round_up(P, tp)
    if P_pad != P:
        x3 = jnp.pad(x3, ((0, 0), (0, 0), (0, P_pad - P)))

    grid = (N, P_pad // tp)

    out = pl.pallas_call(
        _conv1x1_kernel,
        out_shape=jax.ShapeDtypeStruct((N, C_out, P_pad), x3.dtype),
        grid=grid,
        in_specs=[
            pl.BlockSpec((1, C_in, tp), lambda n, p: (n, 0, p)),
            pl.BlockSpec((C_out, C_in), lambda n, p: (0, 0)),   # resident weight
            pl.BlockSpec((C_out, 1), lambda n, p: (0, 0)),      # resident bias
        ],
        out_specs=pl.BlockSpec((1, C_out, tp), lambda n, p: (n, 0, p)),
        compiler_params=pltpu.CompilerParams(
            dimension_semantics=("parallel", "parallel"),
            vmem_limit_bytes=vmem_limit,
        ),
    )(x3, w, b2d)

    if P_pad != P:
        out = out[:, :, :P]
    return out


# ------------------------------------------------------------------ module ---

class DetectionHeadPallas:
    """JAX/Pallas equivalent of the PyTorch DetectionHead (1x1 Conv2d)."""

    def __init__(self, in_channels, num_anchors, num_classes, key,
                 activation_dtype=None):
        out_channels = num_anchors * (5 + num_classes)
        k_w, k_b = jax.random.split(key)
        bound = 1.0 / jnp.sqrt(jnp.float32(in_channels))
        # Conv2d-shaped parameters: weight (C_out, C_in, 1, 1), bias (C_out,)
        self.weight = jax.random.uniform(
            k_w, (out_channels, in_channels, 1, 1),
            dtype=jnp.float32, minval=-bound, maxval=bound)
        self.bias = jax.random.uniform(
            k_b, (out_channels,), dtype=jnp.float32, minval=-bound, maxval=bound)
        self.in_channels = in_channels
        self.out_channels = out_channels
        # Kernel-ready parameter views, hoisted out of the per-call path.
        self.w2d = self.weight[:, :, 0, 0]                  # (C_out, C_in)
        self.b2d = self.bias.reshape(out_channels, 1)       # (C_out, 1)
        # Optional bandwidth lever for v6e/v7x: stream activations in bf16
        # (bias + accumulation stay f32 in-kernel).
        self.activation_dtype = activation_dtype

    def __call__(self, x):
        # x: (N, C_in, H, W) -> (N, C_out, H, W).  No transposes: NCHW is
        # contiguous in (C, H*W), so the reshapes are layout-free.
        N, C, H, W = x.shape
        assert C == self.in_channels
        x3 = x.reshape(N, C, H * W)
        if self.activation_dtype is not None and x3.dtype != self.activation_dtype:
            x3 = x3.astype(self.activation_dtype)
        y3 = conv1x1_pallas(x3, self.w2d, self.b2d)
        return y3.reshape(N, self.out_channels, H, W)


# -------------------------------------------------------------------- main ---

if __name__ == "__main__":
    key = jax.random.PRNGKey(0)
    k_param, k_x1, k_x2 = jax.random.split(key, 3)

    # Small shapes: batch=2, in_channels=4, spatial=16x16, 3 anchors, 2 classes
    N, C_in, H, W = 2, 4, 16, 16
    num_anchors, num_classes = 3, 2
    C_out = num_anchors * (5 + num_classes)

    head = DetectionHeadPallas(C_in, num_anchors, num_classes, k_param)

    def reference(x):
        return (jnp.einsum("nchw,oc->nohw", x, head.w2d)
                + head.bias[None, :, None, None])

    # Case 1: P = H*W = 256 (multiple of 128, no padding path).
    x = jax.random.normal(k_x1, (N, C_in, H, W), dtype=jnp.float32)
    out = jax.block_until_ready(head(x))
    assert out.shape == (N, C_out, H, W)
    assert jnp.allclose(out, reference(x), atol=1e-5, rtol=1e-5)

    # Case 2: P = 100 (not a multiple of 128) — exercises the pad + slice path.
    x2 = jax.random.normal(k_x2, (N, C_in, 10, 10), dtype=jnp.float32)
    out2 = jax.block_until_ready(head(x2))
    assert out2.shape == (N, C_out, 10, 10)
    assert jnp.allclose(out2, reference(x2), atol=1e-5, rtol=1e-5)

    print("KERNEL_OK")
</pallas_src>

<mosaic_0001>
module attributes {stable_mosaic.version = 11 : i64} {
  func.func @_conv1x1_kernel(%arg0: i32, %arg1: i32, %arg2: memref<1x4x256xf32, #tpu.memory_space<vmem>>, %arg3: memref<21x4xf32, #tpu.memory_space<vmem>>, %arg4: memref<21x1xf32, #tpu.memory_space<vmem>>, %arg5: memref<1x21x256xf32, #tpu.memory_space<vmem>>) attributes {dimension_semantics = [#tpu.dimension_semantics<parallel>, #tpu.dimension_semantics<parallel>], iteration_bounds = array<i64: 2, 1>, scalar_prefetch = 0 : i64, scratch_operands = 0 : i64, tpu.core_type = #tpu.core_type<tc>, window_params = [{transform_indices = @transform_0, window_bounds = array<i64: 1, 4, 256>}, {pipeline_mode = #tpu.pipeline_mode<synchronous>, transform_indices = @transform_1, window_bounds = array<i64: 21, 4>}, {pipeline_mode = #tpu.pipeline_mode<synchronous>, transform_indices = @transform_2, window_bounds = array<i64: 21, 1>}, {transform_indices = @transform_3, window_bounds = array<i64: 1, 21, 256>}]} {
    %c0 = arith.constant 0 : index
    %c0_0 = arith.constant 0 : index
    %c0_1 = arith.constant 0 : index
    %0 = vector.load %arg2[%c0, %c0_0, %c0_1] : memref<1x4x256xf32, #tpu.memory_space<vmem>>, vector<1x4x256xf32>
    %1 = vector.shape_cast %0 : vector<1x4x256xf32> to vector<4x256xf32>
    %c0_2 = arith.constant 0 : index
    %c0_3 = arith.constant 0 : index
    %2 = vector.load %arg3[%c0_2, %c0_3] : memref<21x4xf32, #tpu.memory_space<vmem>>, vector<21x4xf32>
    %cst = arith.constant dense<0.000000e+00> : vector<21x256xf32>
    %3 = tpu.matmul %2, %1, %cst {dimension_numbers = #tpu.dot_dimension_numbers<[1], [0], [0], [1], [0, 0, 1, 1], [], []>} : vector<21x4xf32>, vector<4x256xf32>, vector<21x256xf32> -> vector<21x256xf32>
    %c0_4 = arith.constant 0 : index
    %c0_5 = arith.constant 0 : index
    %4 = vector.load %arg4[%c0_4, %c0_5] : memref<21x1xf32, #tpu.memory_space<vmem>>, vector<21x1xf32>
    %5 = vector.broadcast %4 : vector<21x1xf32> to vector<21x256xf32>
    %6 = arith.addf %3, %5 : vector<21x256xf32>
    %c0_6 = arith.constant 0 : index
    %c0_7 = arith.constant 0 : index
    %c0_8 = arith.constant 0 : index
    %7 = vector.load %arg5[%c0_6, %c0_7, %c0_8] : memref<1x21x256xf32, #tpu.memory_space<vmem>>, vector<1x21x256xf32>
    %8 = vector.shape_cast %7 : vector<1x21x256xf32> to vector<21x256xf32>
    %9 = vector.shape_cast %6 : vector<21x256xf32> to vector<1x21x256xf32>
    tpu.vector_store %arg5[%c0_6, %c0_7, %c0_8], %9 {strides = array<i32>} : memref<1x21x256xf32, #tpu.memory_space<vmem>>, vector<1x21x256xf32>,
    return
  }
  func.func @transform_0(%arg0: i32, %arg1: i32) -> (i32, i32, i32) {
    %c0_i32 = arith.constant 0 : i32
    %c0_i32_0 = arith.constant 0 : i32
    return %arg0, %c0_i32, %arg1 : i32, i32, i32
  }
  func.func @transform_1(%arg0: i32, %arg1: i32) -> (i32, i32) {
    %c0_i32 = arith.constant 0 : i32
    %c0_i32_0 = arith.constant 0 : i32
    %c0_i32_1 = arith.constant 0 : i32
    return %c0_i32, %c0_i32_0 : i32, i32
  }
  func.func @transform_2(%arg0: i32, %arg1: i32) -> (i32, i32) {
    %c0_i32 = arith.constant 0 : i32
    %c0_i32_0 = arith.constant 0 : i32
    %c0_i32_1 = arith.constant 0 : i32
    return %c0_i32, %c0_i32_0 : i32, i32
  }
  func.func @transform_3(%arg0: i32, %arg1: i32) -> (i32, i32, i32) {
    %c0_i32 = arith.constant 0 : i32
    %c0_i32_0 = arith.constant 0 : i32
    return %arg0, %c0_i32, %arg1 : i32, i32, i32
  }
}

</mosaic_0001>

<bundles_post_ra>
// kernel: tpu_custom_call.1
= control target key start
LH: loop header
LB: loop body
LE: loop exit
PB: predicated region body
PF: predicated region fallthrough
CT: control target
= control target key end

     0   :  { %s519_s12 = smov 0   ;;  %s521_s13 = smov 0   ;;  %s574_s0 = inlined_call_operand.vmem [shape: f32[2,4,256], index: 0, kind: input, shape index: {}]   ;;  %s575_s1 = inlined_call_operand.vmem [shape: f32[21,4], index: 1, kind: input, shape index: {}]   ;;  %s576_s2 = inlined_call_operand.vmem [shape: f32[21,1], index: 2, kind: input, shape index: {}]   ;;  %s577_s3 = inlined_call_operand.vmem [shape: f32[2,21,256], index: 3, kind: output, shape index: {}]  }
   0x1   :  { %s523_s14 = smov 0  }
   0x2 LB: > { %s25_s15 = sadd.s32 1, %s491_s13  ;;  %p429_p0 = scmp.ge.s32.totalorder %s495_s14, 1  ;;  %s495_s14 = sphi %s523_s14, %s13_s14   ;;  %s491_s13 = sphi %s521_s13, %s579_s13   ;;  %s487_s12 = sphi %s519_s12, %s578_s12  }
   0x3   : > { %p27_p1 = scmp.ge.s32.totalorder %s25_s15, 2  ;;  %p158_p2 = scmp.lt.s32.totalorder %s495_s14, 3 }
   0x5   : > { %s581_s15 = smov (%p27_p1, %s25_s15), 0  ;;  %p159_p3 = pnand %p429_p0, %p158_p2 }
   0x6   : > { %p191_p4 = scmp.lt.s32.totalorder (!%p159_p3), %s487_s12, 1 }
   0x7   : > { %162 = sbr.rel (%p159_p3) target bundleno = 223 (0xdf), region = 32 }
   0xc   : > { %v497_v0 = vmov 0.0   ;;  %v214_v1 = vld [vmem:[%s576_s2] sm:$0xff]  ;;  %s583_s12 = smov (!%p191_p4, %s487_s12), 1  ;;  %v498_v2 = vmov 0   ;;  %v216_v3 = vld [vmem:[%s576_s2 + $0x10] sm:$0x1f] }
   0xd   : > { %313 = vmatprep.mubr.f32.mxu0 %v497_v0  ;;  %319 = vmatprep.mubr.f32.mxu1 %v497_v0  ;;  %s440_s20 = sshll.u32 %s583_s12, 3  ;;  %v215_v4 = vld [vmem:[%s576_s2 + $0x8] sm:$0xff]  ;;  %vm244_vm0 = vcmask 1043456   ;;  %v211_v7 = vld [vmem:[%s575_s1] sm:$0xff]  ;;  %vm234_vm1 = vcmask 31744   ;;  %s443_s5 = smul.u32 48, %s583_s12 }
   0xe   : > { %470 = vset.pattern.permute.xlu0 %v498_v2  ;;  %471 = vset.pattern.permute.xlu1 %v498_v2  ;;  %s198_s25 = scalar_lea.vmem %s574_s0, %s440_s20  ;;  %v212_v8 = vld [vmem:[%s575_s1 + $0x8] sm:$0xff]  ;;  %v213_v9 = vld [vmem:[%s575_s1 + $0x10] sm:$0x1f] }
   0xf   : > { %219 = vperm.xlu0 %470, %v214_v1   ;;  %229 = vperm.xlu1 %471, %v216_v3   ;;  %v210_v5 = vld [vmem:[%s198_s25] sm:$0xff]  ;;  %s208_s8 = scalar_lea.vmem %s577_s3, %s443_s5 }
  0x10   : > { %v233_v6 = vcombine.high %v210_v5, %v210_v5 }
  0x12   : > { %433 = vmatprep.subr.msk.mxu0 %vm244_vm0, %v233_v6  ;;  %441 = vmatprep.subr.msk.mxu1 %vm244_vm0, %v233_v6 }
  0x13   : > { %224 = vperm.xlu0 %470, %v215_v4   ;;  %434 = vmatpush1.msk.msra.mxu0 %vm244_vm0, %v210_v5 }
  0x14   : > { %442 = vmatpush1.msk.msra.mxu1 %vm244_vm0, %v210_v5  ;;  %435 = vmatmul.mubr.msk.f32.vlgmr.msra.gmra.mxu0 %vm234_vm1, %v211_v7 }
  0x15   : > { %436 = vmatmul.mubr.msk.f32.vlgmr.msra.gmra.mxu1 %vm234_vm1, %v212_v8 }
  0x16   : > { %325 = vmatprep.mubr.f32.mxu1 %v497_v0 }
  0x19   : > { %437 = vmatmul.mubr.msk.f32.gmra.mxu1 %vm234_vm1, %v213_v9 }
  0x8a   : > { %v220_v10 = vpop.permute.xlu0 %219  ;;  %v230_v16 = vpop.permute.xlu1 %229 }
  0x8e   : > { %v225_v11 = vpop.permute.xlu0 %224 }
  0xd4   : > { %v315_v12 = vpop.f32.mrf.mxu0 }
  0xd5   : > { %v321_v13 = vpop.f32.mrf.mxu1  ;;  %v316_v14 = vadd.f32 %v315_v12, %v220_v10 }
  0xd6   : > { %v322_v15 = vadd.f32 %v321_v13, %v225_v11  ;;  %v317_v17 = vpop.f32.mrf.mxu0 }
  0xd7   : > { %v323_v18 = vpop.f32.mrf.mxu1  ;;  %332 = vst [vmem:[%s208_s8] sm:$0xff] %v316_v14  ;;  %v318_v19 = vadd.f32 %v317_v17, %v220_v10 }
  0xd8   : > { %334 = vst [vmem:[%s208_s8 + $0x10] sm:$0xff] %v322_v15  ;;  %v324_v20 = vadd.f32 %v323_v18, %v225_v11 }
  0xd9   : > { %v327_v21 = vpop.f32.mrf.mxu1  ;;  %333 = vst [vmem:[%s208_s8 + $0x8] sm:$0xff] %v318_v19 }
  0xda   : > { %335 = vst [vmem:[%s208_s8 + $0x18] sm:$0xff] %v324_v20  ;;  %v328_v22 = vadd.f32 %v327_v21, %v230_v16 }
  0xdb   : > { %v329_v23 = vpop.f32.mrf.mxu1 }
  0xdc   : > { %336 = vst [vmem:[%s208_s8 + $0x20] sm:$0x1f] %v328_v22  ;;  %v330_v24 = vadd.f32 %v329_v23, %v230_v16 }
  0xde   : > { %337 = vst [vmem:[%s208_s8 + $0x28] sm:$0x1f] %v330_v24 }
  0xdf PF: > { %s13_s14 = sadd.s32 1, %s495_s14   ;;  %s578_s12 = smov %s491_s13 }
  0xe0   : > { %p10_p5 = scmp.ge.s32.totalorder %s13_s14, 4   ;;  %s579_s13 = smov %s581_s15 }
  0xe2   :  { %12 = sbr.rel (!%p10_p5) target bundleno = 2 (0x2), region = 62 }

</bundles_post_ra>
